<compile_context>
chip_gen: v7x
topology: tpu7x:2x2x1
jax: 0.10.0
libtpu: 0.0.40
codegen_flags: <defaults>
</compile_context>

<pallas_src>
import jax
import jax.numpy as jnp
from jax.experimental import pallas as pl
from jax.experimental.pallas import tpu as pltpu


def _round_up(n, m):
    return ((n + m - 1) // m) * m


def _mlp_kernel(x_ref, w1_ref, b1_ref, w2_ref, b2_ref, w3_ref, b3_ref, o_ref):
    # x arrives f32; cast to the weight (compute) dtype in-kernel (free: the
    # kernel is DMA-bound, VPU slot has slack).  All dots accumulate in f32 on
    # the MXU; bias + ReLU run in f32.
    x = x_ref[...].astype(w1_ref.dtype)
    h1 = jnp.dot(x, w1_ref[...], preferred_element_type=jnp.float32)
    h1 = jnp.maximum(h1 + b1_ref[...], 0.0)

    h2 = jnp.dot(h1.astype(w2_ref.dtype), w2_ref[...],
                 preferred_element_type=jnp.float32)
    h2 = jnp.maximum(h2 + b2_ref[...], 0.0)

    out = jnp.dot(h2.astype(w3_ref.dtype), w3_ref[...],
                  preferred_element_type=jnp.float32)
    o_ref[...] = (out + b3_ref[...]).astype(o_ref.dtype)


def pad_params(params, compute_dtype=jnp.float32):
    """One-time parameter prep (call once, outside the per-forward path).

    Pads hidden/output feature dims to lane multiples of 128 and casts the
    weight matrices to the MXU operand dtype.  Zero padding is exact: padded
    weight rows/cols and bias lanes are 0 and ReLU(0)=0, so padded lanes stay 0
    through the network; real output lanes are sliced off in the wrapper.
    """
    w1, b1, w2, b2, w3, b3 = params          # W: [in, out], b: [1, out], f32
    H = w1.shape[1]
    Dout = w3.shape[1]
    H_p = _round_up(H, 128)
    Dout_p = _round_up(Dout, 128)

    w1p = jnp.pad(w1, ((0, 0), (0, H_p - H))).astype(compute_dtype)
    b1p = jnp.pad(b1, ((0, 0), (0, H_p - H)))
    w2p = jnp.pad(w2, ((0, H_p - H), (0, H_p - H))).astype(compute_dtype)
    b2p = jnp.pad(b2, ((0, 0), (0, H_p - H)))
    w3p = jnp.pad(w3, ((0, H_p - H), (0, Dout_p - Dout))).astype(compute_dtype)
    b3p = jnp.pad(b3, ((0, 0), (0, Dout_p - Dout)))
    return (w1p, b1p, w2p, b2p, w3p, b3p)


def mlp_forward(x, padded_params, num_nodes, output_dim, *, batch_tile=1024):
    """x: [batch, input_len, num_nodes, input_dim] -> [batch, num_nodes, output_dim]

    `padded_params` must come from pad_params() (done once, not per call).
    """
    w1p, b1p, w2p, b2p, w3p, b3p = padded_params
    B = x.shape[0]
    x_flat = x.reshape(B, -1)                 # [B, Din]  (glue, plain JAX view)
    Din = x_flat.shape[1]
    H_p = w1p.shape[1]
    Dout_p = w3p.shape[1]
    Dout = num_nodes * output_dim
    compute_dtype = w1p.dtype
    out_dtype = compute_dtype                 # bf16 writeback in bf16 mode

    # Batch tile: always a multiple of 8 (sublane rule), capped by batch_tile,
    # and small enough that the grid has >= 2 tiles whenever B allows so the
    # "parallel" batch axis can shard across both v7x TensorCores.
    TB = min(int(batch_tile), max(8, _round_up(pl.cdiv(B, 2), 8)))
    TB = _round_up(TB, 8)
    assert TB % 8 == 0
    grid = (pl.cdiv(B, TB),)

    out = pl.pallas_call(
        _mlp_kernel,
        out_shape=jax.ShapeDtypeStruct((B, Dout_p), out_dtype),
        grid=grid,
        in_specs=[
            # x streamed per batch tile, full-K block (no padded HBM copy).
            pl.BlockSpec((TB, Din), lambda i: (i, 0)),
            # Weights / biases: constant index_map -> VMEM-resident, fetched once.
            pl.BlockSpec((Din, H_p), lambda i: (0, 0)),
            pl.BlockSpec((1, H_p), lambda i: (0, 0)),
            pl.BlockSpec((H_p, H_p), lambda i: (0, 0)),
            pl.BlockSpec((1, H_p), lambda i: (0, 0)),
            pl.BlockSpec((H_p, Dout_p), lambda i: (0, 0)),
            pl.BlockSpec((1, Dout_p), lambda i: (0, 0)),
        ],
        out_specs=pl.BlockSpec((TB, Dout_p), lambda i: (i, 0)),
        compiler_params=pltpu.CompilerParams(
            dimension_semantics=("parallel",),   # shard batch tiles across TCs (v7x)
        ),
    )(x_flat, w1p, b1p, w2p, b2p, w3p, b3p)

    return out[:, :Dout].reshape(B, num_nodes, output_dim)


def init_params(input_size, hidden_dim, out_features, key):
    """Deterministic init mimicking nn.Linear default (uniform +/- 1/sqrt(fan_in))."""
    ks = jax.random.split(key, 6)

    def linear(kw, kb, fan_in, fan_out):
        bound = 1.0 / jnp.sqrt(fan_in)
        w = jax.random.uniform(kw, (fan_in, fan_out), jnp.float32, -bound, bound)
        b = jax.random.uniform(kb, (1, fan_out), jnp.float32, -bound, bound)
        return w, b

    w1, b1 = linear(ks[0], ks[1], input_size, hidden_dim)
    w2, b2 = linear(ks[2], ks[3], hidden_dim, hidden_dim)
    w3, b3 = linear(ks[4], ks[5], hidden_dim, out_features)
    return (w1, b1, w2, b2, w3, b3)


if __name__ == "__main__":
    # Small shapes consistent with the module's forward.
    batch_size = 2
    input_len = 7      # lags
    num_nodes = 4      # nodes
    input_dim = 2      # features per node per step
    hidden_dim = 32
    output_dim = 1

    input_size = input_len * num_nodes * input_dim           # 56
    out_features = num_nodes * output_dim                     # 4

    key = jax.random.PRNGKey(0)
    k_x, k_p = jax.random.split(key)

    x = jax.random.normal(k_x, (batch_size, input_len, num_nodes, input_dim),
                          dtype=jnp.float32)
    params = init_params(input_size, hidden_dim, out_features, k_p)

    # Reference (plain JAX, exact torch-module math).
    w1, b1, w2, b2, w3, b3 = params
    xf = x.reshape(batch_size, -1)
    ref = jnp.maximum(xf @ w1 + b1, 0.0)
    ref = jnp.maximum(ref @ w2 + b2, 0.0)
    ref = (ref @ w3 + b3).reshape(batch_size, num_nodes, output_dim)

    # 1) f32 path: matches the PyTorch module numerics.
    params_f32 = pad_params(params, compute_dtype=jnp.float32)   # one-time prep
    out_f32 = jax.block_until_ready(
        mlp_forward(x, params_f32, num_nodes, output_dim))
    assert out_f32.shape == (batch_size, num_nodes, output_dim)
    assert jnp.allclose(out_f32, ref, atol=1e-5, rtol=1e-5)

    # 2) bf16-operand path (throughput mode): f32 accumulation, bf16 writeback.
    params_bf16 = pad_params(params, compute_dtype=jnp.bfloat16)  # one-time prep
    out_bf16 = jax.block_until_ready(
        mlp_forward(x, params_bf16, num_nodes, output_dim))
    assert out_bf16.shape == (batch_size, num_nodes, output_dim)
    assert jnp.allclose(out_bf16.astype(jnp.float32), ref, atol=5e-2, rtol=0.0)

    print("KERNEL_OK")
</pallas_src>

<mosaic_0001>
module attributes {stable_mosaic.version = 11 : i64} {
  func.func @_mlp_kernel(%arg0: i32, %arg1: memref<8x56xf32, #tpu.memory_space<vmem>>, %arg2: memref<56x128xf32, #tpu.memory_space<vmem>>, %arg3: memref<1x128xf32, #tpu.memory_space<vmem>>, %arg4: memref<128x128xf32, #tpu.memory_space<vmem>>, %arg5: memref<1x128xf32, #tpu.memory_space<vmem>>, %arg6: memref<128x128xf32, #tpu.memory_space<vmem>>, %arg7: memref<1x128xf32, #tpu.memory_space<vmem>>, %arg8: memref<8x128xf32, #tpu.memory_space<vmem>>) attributes {dimension_semantics = [#tpu.dimension_semantics<parallel>], iteration_bounds = array<i64: 1>, scalar_prefetch = 0 : i64, scratch_operands = 0 : i64, tpu.core_type = #tpu.core_type<tc>, window_params = [{transform_indices = @transform_0, window_bounds = array<i64: 8, 56>}, {pipeline_mode = #tpu.pipeline_mode<synchronous>, transform_indices = @transform_1, window_bounds = array<i64: 56, 128>}, {pipeline_mode = #tpu.pipeline_mode<synchronous>, transform_indices = @transform_2, window_bounds = array<i64: 1, 128>}, {pipeline_mode = #tpu.pipeline_mode<synchronous>, transform_indices = @transform_3, window_bounds = array<i64: 128, 128>}, {pipeline_mode = #tpu.pipeline_mode<synchronous>, transform_indices = @transform_4, window_bounds = array<i64: 1, 128>}, {pipeline_mode = #tpu.pipeline_mode<synchronous>, transform_indices = @transform_5, window_bounds = array<i64: 128, 128>}, {pipeline_mode = #tpu.pipeline_mode<synchronous>, transform_indices = @transform_6, window_bounds = array<i64: 1, 128>}, {transform_indices = @transform_7, window_bounds = array<i64: 8, 128>}]} {
    %c0 = arith.constant 0 : index
    %c0_0 = arith.constant 0 : index
    %0 = vector.load %arg1[%c0, %c0_0] : memref<8x56xf32, #tpu.memory_space<vmem>>, vector<8x56xf32>
    %c0_1 = arith.constant 0 : index
    %c0_2 = arith.constant 0 : index
    %1 = vector.load %arg2[%c0_1, %c0_2] : memref<56x128xf32, #tpu.memory_space<vmem>>, vector<56x128xf32>
    %cst = arith.constant dense<0.000000e+00> : vector<8x128xf32>
    %2 = tpu.matmul %0, %1, %cst {dimension_numbers = #tpu.dot_dimension_numbers<[1], [0], [0], [1], [0, 0, 1, 1], [], []>} : vector<8x56xf32>, vector<56x128xf32>, vector<8x128xf32> -> vector<8x128xf32>
    %c0_3 = arith.constant 0 : index
    %c0_4 = arith.constant 0 : index
    %3 = vector.load %arg3[%c0_3, %c0_4] : memref<1x128xf32, #tpu.memory_space<vmem>>, vector<1x128xf32>
    %4 = vector.broadcast %3 : vector<1x128xf32> to vector<8x128xf32>
    %5 = arith.addf %2, %4 : vector<8x128xf32>
    %cst_5 = arith.constant 0.000000e+00 : f32
    %6 = vector.broadcast %cst_5 : f32 to vector<8x128xf32>
    %7 = arith.maximumf %5, %6 : vector<8x128xf32>
    %c0_6 = arith.constant 0 : index
    %c0_7 = arith.constant 0 : index
    %8 = vector.load %arg4[%c0_6, %c0_7] : memref<128x128xf32, #tpu.memory_space<vmem>>, vector<128x128xf32>
    %cst_8 = arith.constant dense<0.000000e+00> : vector<8x128xf32>
    %9 = tpu.matmul %7, %8, %cst_8 {dimension_numbers = #tpu.dot_dimension_numbers<[1], [0], [0], [1], [0, 0, 1, 1], [], []>} : vector<8x128xf32>, vector<128x128xf32>, vector<8x128xf32> -> vector<8x128xf32>
    %c0_9 = arith.constant 0 : index
    %c0_10 = arith.constant 0 : index
    %10 = vector.load %arg5[%c0_9, %c0_10] : memref<1x128xf32, #tpu.memory_space<vmem>>, vector<1x128xf32>
    %11 = vector.broadcast %10 : vector<1x128xf32> to vector<8x128xf32>
    %12 = arith.addf %9, %11 : vector<8x128xf32>
    %cst_11 = arith.constant 0.000000e+00 : f32
    %13 = vector.broadcast %cst_11 : f32 to vector<8x128xf32>
    %14 = arith.maximumf %12, %13 : vector<8x128xf32>
    %c0_12 = arith.constant 0 : index
    %c0_13 = arith.constant 0 : index
    %15 = vector.load %arg6[%c0_12, %c0_13] : memref<128x128xf32, #tpu.memory_space<vmem>>, vector<128x128xf32>
    %cst_14 = arith.constant dense<0.000000e+00> : vector<8x128xf32>
    %16 = tpu.matmul %14, %15, %cst_14 {dimension_numbers = #tpu.dot_dimension_numbers<[1], [0], [0], [1], [0, 0, 1, 1], [], []>} : vector<8x128xf32>, vector<128x128xf32>, vector<8x128xf32> -> vector<8x128xf32>
    %c0_15 = arith.constant 0 : index
    %c0_16 = arith.constant 0 : index
    %17 = vector.load %arg7[%c0_15, %c0_16] : memref<1x128xf32, #tpu.memory_space<vmem>>, vector<1x128xf32>
    %18 = vector.broadcast %17 : vector<1x128xf32> to vector<8x128xf32>
    %19 = arith.addf %16, %18 : vector<8x128xf32>
    %c0_17 = arith.constant 0 : index
    %c0_18 = arith.constant 0 : index
    %20 = vector.load %arg8[%c0_17, %c0_18] : memref<8x128xf32, #tpu.memory_space<vmem>>, vector<8x128xf32>
    tpu.vector_store %arg8[%c0_17, %c0_18], %19 {strides = array<i32>} : memref<8x128xf32, #tpu.memory_space<vmem>>, vector<8x128xf32>,
    return
  }
  func.func @transform_0(%arg0: i32) -> (i32, i32) {
    %c0_i32 = arith.constant 0 : i32
    %c0_i32_0 = arith.constant 0 : i32
    return %arg0, %c0_i32 : i32, i32
  }
  func.func @transform_1(%arg0: i32) -> (i32, i32) {
    %c0_i32 = arith.constant 0 : i32
    %c0_i32_0 = arith.constant 0 : i32
    %c0_i32_1 = arith.constant 0 : i32
    return %c0_i32, %c0_i32_0 : i32, i32
  }
  func.func @transform_2(%arg0: i32) -> (i32, i32) {
    %c0_i32 = arith.constant 0 : i32
    %c0_i32_0 = arith.constant 0 : i32
    %c0_i32_1 = arith.constant 0 : i32
    return %c0_i32, %c0_i32_0 : i32, i32
  }
  func.func @transform_3(%arg0: i32) -> (i32, i32) {
    %c0_i32 = arith.constant 0 : i32
    %c0_i32_0 = arith.constant 0 : i32
    %c0_i32_1 = arith.constant 0 : i32
    return %c0_i32, %c0_i32_0 : i32, i32
  }
  func.func @transform_4(%arg0: i32) -> (i32, i32) {
    %c0_i32 = arith.constant 0 : i32
    %c0_i32_0 = arith.constant 0 : i32
    %c0_i32_1 = arith.constant 0 : i32
    return %c0_i32, %c0_i32_0 : i32, i32
  }
  func.func @transform_5(%arg0: i32) -> (i32, i32) {
    %c0_i32 = arith.constant 0 : i32
    %c0_i32_0 = arith.constant 0 : i32
    %c0_i32_1 = arith.constant 0 : i32
    return %c0_i32, %c0_i32_0 : i32, i32
  }
  func.func @transform_6(%arg0: i32) -> (i32, i32) {
    %c0_i32 = arith.constant 0 : i32
    %c0_i32_0 = arith.constant 0 : i32
    %c0_i32_1 = arith.constant 0 : i32
    return %c0_i32, %c0_i32_0 : i32, i32
  }
  func.func @transform_7(%arg0: i32) -> (i32, i32) {
    %c0_i32 = arith.constant 0 : i32
    %c0_i32_0 = arith.constant 0 : i32
    return %arg0, %c0_i32 : i32, i32
  }
}

</mosaic_0001>

<bundles_post_ra>
// kernel: tpu_custom_call.1
= control target key start
LH: loop header
LB: loop body
LE: loop exit
PB: predicated region body
PF: predicated region fallthrough
CT: control target
= control target key end

     0   :  { %12 = vsyncpa [#allocation3], 0  ;;  %s864_s0 = inlined_call_operand.hbm [shape: f32[2,56], index: 0, kind: input, shape index: {}]   ;;  %s865_s1 = inlined_call_operand.hbm [shape: f32[56,128], index: 1, kind: input, shape index: {}]   ;;  %s866_s2 = inlined_call_operand.vmem [shape: f32[1,128], index: 2, kind: input, shape index: {}]   ;;  %s867_s3 = inlined_call_operand.hbm [shape: f32[128,128], index: 3, kind: input, shape index: {}]   ;;  %s868_s4 = inlined_call_operand.vmem [shape: f32[1,128], index: 4, kind: input, shape index: {}]   ;;  %s869_s5 = inlined_call_operand.hbm [shape: f32[128,128], index: 5, kind: input, shape index: {}]   ;;  %s870_s6 = inlined_call_operand.vmem [shape: f32[1,128], index: 6, kind: input, shape index: {}]   ;;  %s871_s7 = inlined_call_operand.hbm [shape: f32[2,128], index: 7, kind: output, shape index: {}]  }
   0x1   :  { %13 = vsyncpa [#allocation6], 0 }
   0x2   :  { %14 = vsyncpa [#allocation9], 0 }
   0x3   :  { %15 = vsyncpa [#allocation4], 0 }
   0x4   :  { %20 = vsyncadd [#allocation3], 96  ;;  %s699_s24 = smov [#allocation5]   ;;  %s581_s28 = scalar_lea.hbm %s865_s1, 896 }
   0x5   :  { %s33_s25 = sshll.u32 %s699_s24, 4  ;;  %p582_p0 = scmp.ne.s32.totalorder %s865_s1, %s581_s28  ;;  %s34_s25 = int_to_ptr.vmem [resolvable:$true] %s33_s25 }
   0x6   :  { %p585_p1 = scmp.lt.u32.totalorder %s581_s28, %s865_s1 }
   0x8   :  { %p587_p2 = pnand %p585_p1, %p582_p0 }
   0xa   :  { %590 = shalt.err (!%p587_p2)
}
   0xb   :  { %s591_s10 = scalar_lea.vmem %s34_s25, 896  ;;  %p596_p4 = scmp.lt.s32.totalorder %s34_s25, %s34_s25 }
   0xc   :  { %p592_p3 = scmp.ne.s32.totalorder %s34_s25, %s591_s10  ;;  %p597_p5 = scmp.lt.s32.totalorder %s591_s10, %s591_s10 }
   0xe   :  { %p598_p6 = por %p597_p5, %p596_p4 }
  0x10   :  { %p599_p7 = pnand %p598_p6, %p592_p3 }
  0x12   :  { %602 = shalt.err (!%p599_p7)
}
  0x13   :  { %s700_s11 = smov 128   ;;  %s701_s12 = smov 8  }
  0x14   :  { %39 = dma.hbm_to_vmem [thread:$0]  %s865_s1, 896, %s34_s25, [#allocation6], %s700_s11, %s700_s11, %s701_s12  }
  0x15   :  { %s702_s15 = smov [#allocation2]   ;;  %s603_s19 = scalar_lea.hbm %s864_s0, 32 }
  0x16   :  { %s21_s16 = sshll.u32 %s702_s15, 4  ;;  %p604_p8 = scmp.ne.s32.totalorder %s864_s0, %s603_s19  ;;  %s22_s16 = int_to_ptr.vmem [resolvable:$true] %s21_s16 }
  0x17   :  { %p607_p9 = scmp.lt.u32.totalorder %s603_s19, %s864_s0 }
  0x19   :  { %p609_p10 = pnand %p607_p9, %p604_p8 }
  0x1b   :  { %612 = shalt.err (!%p609_p10)
}
  0x1c   :  { %s613_s24 = scalar_lea.vmem %s22_s16, 32  ;;  %s617_s1 = scalar_lea.vmem %s22_s16, 128 }
  0x1d   :  { %p614_p11 = scmp.ne.s32.totalorder %s22_s16, %s613_s24  ;;  %p618_p12 = scmp.lt.s32.totalorder %s22_s16, %s22_s16 }
  0x1e   :  { %p619_p13 = scmp.lt.s32.totalorder %s617_s1, %s613_s24 }
  0x20   :  { %p620_p0 = por %p619_p13, %p618_p12 }
  0x22   :  { %p621_p1 = pnand %p620_p0, %p614_p11 }
  0x24   :  { %624 = shalt.err (!%p621_p1)
}
  0x25   :  { %s703_s25 = smov 32   ;;  %s704_s26 = smov 2  }
  0x26   :  { %27 = dma.hbm_to_vmem [thread:$0]  %s864_s0, 32, %s22_s16, [#allocation3], %s703_s25, %s703_s25, %s704_s26  }
  0x27   :  { %s705_s29 = smov [#allocation7]   ;;  %s706_s8 = smov [#allocation8]  }
  0x28   :  { %s47_s30 = sshll.u32 %s705_s29, 4  ;;  %s61_s9 = sshll.u32 %s706_s8, 4  ;;  %s48_s30 = int_to_ptr.vmem [resolvable:$true] %s47_s30  ;;  %s781_s9 = int_to_ptr.vmem [resolvable:$true] %s61_s9 }
  0x29   :  { %s625_s14 = scalar_lea.hbm %s867_s3, 2048 }
  0x2a   :  { %p626_p2 = scmp.ne.s32.totalorder %s867_s3, %s625_s14  ;;  %p629_p3 = scmp.lt.u32.totalorder %s625_s14, %s867_s3 }
  0x2c   :  { %p631_p4 = pnand %p629_p3, %p626_p2 }
  0x2e   :  { %634 = shalt.err (!%p631_p4)
}
  0x2f   :  { %s635_s0 = scalar_lea.vmem %s48_s30, 2048  ;;  %p640_p6 = scmp.lt.s32.totalorder %s48_s30, %s48_s30 }
  0x30   :  { %p636_p5 = scmp.ne.s32.totalorder %s48_s30, %s635_s0  ;;  %p641_p7 = scmp.lt.s32.totalorder %s635_s0, %s635_s0 }
  0x32   :  { %p642_p8 = por %p641_p7, %p640_p6 }
  0x34   :  { %p643_p9 = pnand %p642_p8, %p636_p5 }
  0x36   :  { %646 = shalt.err (!%p643_p9)
}
  0x37   :  { %53 = dma.hbm_to_vmem [thread:$0]  %s867_s3, 2048, %s48_s30, [#allocation6], %s700_s11, %s700_s11, %s701_s12  }
  0x38   :  { %s647_s23 = scalar_lea.hbm %s869_s5, 2048 }
  0x39   :  { %p648_p10 = scmp.ne.s32.totalorder %s869_s5, %s647_s23  ;;  %p651_p11 = scmp.lt.u32.totalorder %s647_s23, %s869_s5 }
  0x3b   :  { %p653_p12 = pnand %p651_p11, %p648_p10 }
  0x3d   :  { %656 = shalt.err (!%p653_p12)
}
  0x3e   :  { %s657_s29 = scalar_lea.vmem %s781_s9, 2048  ;;  %p662_p0 = scmp.lt.s32.totalorder %s781_s9, %s781_s9 }
  0x3f   :  { %p658_p13 = scmp.ne.s32.totalorder %s781_s9, %s657_s29  ;;  %p663_p1 = scmp.lt.s32.totalorder %s657_s29, %s657_s29 }
  0x41   :  { %p664_p2 = por %p663_p1, %p662_p0 }
  0x43   :  { %p665_p3 = pnand %p664_p2, %p658_p13 }
  0x45   :  { %668 = shalt.err (!%p665_p3)
}
  0x46   :  { %67 = dma.hbm_to_vmem [thread:$0]  %s869_s5, 2048, %s781_s9, [#allocation9], %s700_s11, %s700_s11, %s701_s12  }
  0x47   :  { %691 = dma.done.wait [#allocation3], 128  }
  0x48   :  { %692 = vsyncadd [#allocation3], 4294967168 }
  0x49   :  { %693 = dma.done.wait [#allocation6], 2944  }
  0x4a   :  { %694 = vsyncadd [#allocation6], 4294964352 }
  0x4b   :  { %695 = dma.done.wait [#allocation9], 2048  }
  0x4c   :  { %696 = vsyncadd [#allocation9], 4294965248  ;;  %v707_v0 = vmov 0.0|0.0   ;;  %vm708_vm0 = vmmov 0   ;;  %v709_v1 = vmov 0.0   ;;  %v83_v2 = vld [vmem:[#allocation5] sm:$0xff] }
  0x4d   :  { %512 = vmatprep.subr.bf16.mxu0 %v707_v0  ;;  %439 = vmatprep.mubr.msk.f32.mxu0 %vm708_vm0, %v709_v1  ;;  %v84_v3 = vld [vmem:[#allocation5 + $0x8] sm:$0xff]  ;;  %v85_v4 = vld [vmem:[#allocation5 + $0x10] sm:$0xff]  ;;  %v86_v6 = vld [vmem:[#allocation5 + $0x18] sm:$0xff]  ;;  %vm97_vm1 = vcmask 457728  }
  0x4e   :  { %521 = vmatprep.subr.bf16.mxu1 %v707_v0  ;;  %474 = vmatprep.mubr.msk.f32.mxu1 %vm708_vm0, %v709_v1  ;;  %v513_v5 = vpack.c.bf16 %v84_v3, %v83_v2  ;;  %v172_v7 = vld [vmem:[#allocation7] sm:$0xff]  ;;  %v516_v8 = vpack.c.bf16 %v86_v6, %v85_v4  ;;  %v173_v9 = vld [vmem:[#allocation7 + $0x8] sm:$0xff]  ;;  %v174_v10 = vld [vmem:[#allocation7 + $0x10] sm:$0xff] }
  0x4f   :  { %v175_v11 = vld [vmem:[#allocation7 + $0x18] sm:$0xff]  ;;  %v87_v12 = vld [vmem:[#allocation5 + $0x20] sm:$0xff]  ;;  %v88_v13 = vld [vmem:[#allocation5 + $0x28] sm:$0xff]  ;;  %v522_v14 = vpack.c.bf16 %v173_v9, %v172_v7 }
  0x50   :  { %514 = vmatpush3.bf16.msra.mxu0 %v513_v5  ;;  %v525_v15 = vpack.c.bf16 %v175_v11, %v174_v10  ;;  %v519_v16 = vpack.c.bf16 %v88_v13, %v87_v12  ;;  %v176_v17 = vld [vmem:[#allocation7 + $0x20] sm:$0xff]  ;;  %v177_v18 = vld [vmem:[#allocation7 + $0x28] sm:$0xff]  ;;  %v178_v20 = vld [vmem:[#allocation7 + $0x30] sm:$0xff] }
  0x51   :  { %515 = vmatprep.subr.bf16.mxu0 %v707_v0  ;;  %523 = vmatpush3.bf16.msra.mxu1 %v522_v14  ;;  %v528_v19 = vpack.c.bf16 %v177_v18, %v176_v17  ;;  %v179_v21 = vld [vmem:[#allocation7 + $0x38] sm:$0xff]  ;;  %v82_v23 = vld [vmem:[#allocation2] sm:$0xff]  ;;  %v181_v26 = vld [vmem:[#allocation7 + $0x48] sm:$0xff] }
  0x52   :  { %524 = vmatprep.subr.bf16.mxu1 %v707_v0  ;;  %v89_v22 = vld [vmem:[#allocation5 + $0x30] sm:$0xff]  ;;  %v531_v24 = vpack.c.bf16 %v179_v21, %v178_v20  ;;  %v180_v25 = vld [vmem:[#allocation7 + $0x40] sm:$0xff]  ;;  %v182_v28 = vld [vmem:[#allocation7 + $0x50] sm:$0xff] }
  0x53   :  { %v534_v27 = vpack.c.bf16 %v181_v26, %v180_v25  ;;  %v183_v29 = vld [vmem:[#allocation7 + $0x58] sm:$0xff]  ;;  %v184_v31 = vld [vmem:[#allocation7 + $0x60] sm:$0xff]  ;;  %v185_v32 = vld [vmem:[#allocation7 + $0x68] sm:$0xff] }
  0x54   :  { %517 = vmatpush3.bf16.msra.mxu0 %v516_v8  ;;  %v537_v30 = vpack.c.bf16 %v183_v29, %v182_v28  ;;  %v540_v33 = vpack.c.bf16 %v185_v32, %v184_v31  ;;  %v186_v34 = vld [vmem:[#allocation7 + $0x70] sm:$0xff]  ;;  %v187_v35 = vld [vmem:[#allocation7 + $0x78] sm:$0xff]  ;;  %v266_v37 = vld [vmem:[#allocation8] sm:$0xff] }
  0x55   :  { %518 = vmatprep.subr.bf16.mxu0 %v707_v0  ;;  %526 = vmatpush3.bf16.msra.mxu1 %v525_v15  ;;  %v543_v36 = vpack.c.bf16 %v187_v35, %v186_v34  ;;  %v267_v38 = vld [vmem:[#allocation8 + $0x8] sm:$0xff]  ;;  %v268_v39 = vld [vmem:[#allocation8 + $0x10] sm:$0xff]  ;;  %v269_v41 = vld [vmem:[#allocation8 + $0x18] sm:$0xff] }
  0x56   :  { %527 = vmatprep.subr.bf16.mxu1 %v707_v0  ;;  %v546_v40 = vpack.c.bf16 %v267_v38, %v266_v37  ;;  %v549_v42 = vpack.c.bf16 %v269_v41, %v268_v39  ;;  %v270_v43 = vld [vmem:[#allocation8 + $0x20] sm:$0xff]  ;;  %v271_v44 = vld [vmem:[#allocation8 + $0x28] sm:$0xff]  ;;  %v272_v46 = vld [vmem:[#allocation8 + $0x30] sm:$0xff] }
  0x57   :  { %v552_v45 = vpack.c.bf16 %v271_v44, %v270_v43  ;;  %v273_v47 = vld [vmem:[#allocation8 + $0x38] sm:$0xff]  ;;  %v274_v49 = vld [vmem:[#allocation8 + $0x40] sm:$0xff]  ;;  %v275_v50 = vld [vmem:[#allocation8 + $0x48] sm:$0xff] }
  0x58   :  { %520 = vmatpush3.bf16.msra.mxu0 %v519_v16  ;;  %v555_v48 = vpack.c.bf16 %v273_v47, %v272_v46  ;;  %v558_v51 = vpack.c.bf16 %v275_v50, %v274_v49  ;;  %v276_v52 = vld [vmem:[#allocation8 + $0x50] sm:$0xff]  ;;  %v277_v53 = vld [vmem:[#allocation8 + $0x58] sm:$0xff]  ;;  %v278_v55 = vld [vmem:[#allocation8 + $0x60] sm:$0xff] }
  0x59   :  { %437 = vmatprep.subr.mxu0 %v709_v1  ;;  %529 = vmatpush3.bf16.msra.mxu1 %v528_v19  ;;  %v561_v54 = vpack.c.bf16 %v277_v53, %v276_v52  ;;  %v279_v56 = vld [vmem:[#allocation8 + $0x68] sm:$0xff]  ;;  %v379_v58 = vld [vmem:[%s866_s2] ss:$0 sm:$0xff]  ;;  %v280_v63 = vld [vmem:[#allocation8 + $0x70] sm:$0xff] }
  0x5a   :  { %530 = vmatprep.subr.bf16.mxu1 %v707_v0  ;;  %v564_v57 = vpack.c.bf16 %v279_v56, %v278_v55  ;;  %v381_v3 = vld [vmem:[%s868_s4] ss:$0 sm:$0xff] }
  0x5b   :  { %v382_v7 = vld [vmem:[%s870_s6] ss:$0 sm:$0xff] }
  0x5c   :  { %438 = vmatpush3.msra.mxu0 %v89_v22 }
  0x5d   :  { %440 = vmatmul.mubr.msk.f32.vlgmr.msra.gmra.mrb[0].mxu0 %vm97_vm1, %v82_v23  ;;  %545 = vmatprep.subr.bf16.mxu0 %v707_v0 }
  0x5e   :  { %509 = vmatprep.mubr.msk.f32.mxu0 %vm708_vm0, %v709_v1  ;;  %532 = vmatpush3.bf16.msra.mxu1 %v531_v24  ;;  %v281_v1 = vld [vmem:[#allocation8 + $0x78] sm:$0xff] }
  0x5f   :  { %533 = vmatprep.subr.bf16.mxu1 %v707_v0  ;;  %547 = vmatpush3.bf16.msra.mxu0 %v546_v40  ;;  %v567_v2 = vpack.c.bf16 %v281_v1, %v280_v63 }
  0x60   :  { %548 = vmatprep.subr.bf16.mxu0 %v707_v0 }
  0x62   :  { %535 = vmatpush3.bf16.msra.mxu1 %v534_v27 }
  0x63   :  { %536 = vmatprep.subr.bf16.mxu1 %v707_v0  ;;  %550 = vmatpush3.bf16.msra.mxu0 %v549_v42 }
  0x64   :  { %551 = vmatprep.subr.bf16.mxu0 %v707_v0 }
  0x66   :  { %538 = vmatpush3.bf16.msra.mxu1 %v537_v30 }
  0x67   :  { %539 = vmatprep.subr.bf16.mxu1 %v707_v0  ;;  %553 = vmatpush3.bf16.msra.mxu0 %v552_v45 }
  0x68   :  { %554 = vmatprep.subr.bf16.mxu0 %v707_v0 }
  0x6a   :  { %541 = vmatpush3.bf16.msra.mxu1 %v540_v33 }
  0x6b   :  { %542 = vmatprep.subr.bf16.mxu1 %v707_v0  ;;  %556 = vmatpush3.bf16.msra.mxu0 %v555_v48 }
  0x6c   :  { %557 = vmatprep.subr.bf16.mxu0 %v707_v0 }
  0x6e   :  { %544 = vmatpush3.bf16.msra.mxu1 %v543_v36 }
  0x6f   :  { %559 = vmatpush3.bf16.msra.mxu0 %v558_v51 }
  0x70   :  { %560 = vmatprep.subr.bf16.mxu0 %v707_v0 }
  0x73   :  { %562 = vmatpush3.bf16.msra.mxu0 %v561_v54 }
  0x74   :  { %563 = vmatprep.subr.bf16.mxu0 %v707_v0 }
  0x77   :  { %565 = vmatpush3.bf16.msra.mxu0 %v564_v57 }
  0x78   :  { %566 = vmatprep.subr.bf16.mxu0 %v707_v0 }
  0x7b   :  { %568 = vmatpush3.bf16.msra.mxu0 %v567_v2 }
 0x130   :  { %v167_v59 = vpop.f32.mrb[0].mxu0 }
 0x131   :  { %v168_v60 = vadd.f32 %v379_v58, %v167_v59  ;;  %v441_v61 = vpop.f32.mrb[1].mxu0 }
 0x133   :  { %v171_v62 = vmax.f32 %v168_v60, 0.0 }
 0x135   :  { %475 = vmatmul.mubr.f32.vlgmr.msra.gmra.mrb[0].mxu1 %v171_v62 }
 0x208   :  { %v261_v4 = vpop.f32.mrb[0].mxu1 }
 0x209   :  { %v262_v5 = vadd.f32 %v381_v3, %v261_v4  ;;  %v476_v0 = vpop.f32.mrb[1].mxu1 }
 0x20b   :  { %v265_v6 = vmax.f32 %v262_v5, 0.0 }
 0x20d   :  { %510 = vmatmul.mubr.f32.vlgmr.msra.gmra.mrb[2].mxu0 %v265_v6 }
 0x2e0   :  { %v355_v8 = vpop.f32.mrb[2].mxu0 }
 0x2e1   :  { %v356_v9 = vadd.f32 %v382_v7, %v355_v8  ;;  %v511_v10 = vpop.f32.mrb[3].mxu0 }
 0x2e3   :  { %359 = vst [vmem:[#allocation10] sm:$0xff] %v356_v9 }
 0x2e4   :  { %364 = vsyncadd [#allocation4], 96  ;;  %s710_s10 = smov [#allocation10]  }
 0x2e5   :  { %s365_s13 = sshll.u32 %s710_s10, 4  ;;  %s366_s13 = int_to_ptr.vmem [resolvable:$true] %s365_s13 }
 0x2e6   :  { %s669_s14 = scalar_lea.vmem %s366_s13, 32  ;;  %s673_s4 = scalar_lea.vmem %s366_s13, 128 }
 0x2e7   :  { %p670_p4 = scmp.ne.s32.totalorder %s366_s13, %s669_s14  ;;  %p674_p5 = scmp.lt.s32.totalorder %s366_s13, %s366_s13 }
 0x2e8   :  { %p675_p6 = scmp.lt.s32.totalorder %s673_s4, %s669_s14 }
 0x2ea   :  { %p676_p7 = por %p675_p6, %p674_p5 }
 0x2ec   :  { %p677_p8 = pnand %p676_p7, %p670_p4 }
 0x2ee   :  { %680 = shalt.err (!%p677_p8)
}
 0x2ef   :  { %s681_s6 = scalar_lea.hbm %s871_s7, 32 }
 0x2f0   :  { %p682_p9 = scmp.ne.s32.totalorder %s871_s7, %s681_s6  ;;  %p685_p10 = scmp.lt.u32.totalorder %s681_s6, %s871_s7 }
 0x2f2   :  { %p687_p11 = pnand %p685_p10, %p682_p9 }
 0x2f4   :  { %690 = shalt.err (!%p687_p11)
}
 0x2f5   :  { %371 = dma.vmem_to_hbm [thread:$0]  %s366_s13, 32, %s871_s7, [#allocation4], %s703_s25, %s703_s25, %s704_s26  }
 0x2f6   :  { %697 = dma.done.wait [#allocation4], 128  }
 0x2f7   :  { %698 = vsyncadd [#allocation4], 4294967168 }
 0x2f8   :  { %375 = vsyncpa [#allocation3], 1 }
 0x2f9   :  { %376 = vsyncpa [#allocation6], 1 }
 0x2fa   :  { %377 = vsyncpa [#allocation9], 1 }
 0x2fb   :  { %378 = vsyncpa [#allocation4], 1 }

</bundles_post_ra>
